<compile_context>
chip_gen: v7x
topology: tpu7x:2x2x1
jax: 0.10.0
libtpu: 0.0.40
codegen_flags: <defaults>
</compile_context>

<pallas_src>
import functools

import jax
import jax.numpy as jnp
from jax.experimental import pallas as pl
from jax.experimental.pallas import tpu as pltpu


def _round_up(x, m):
    return ((x + m - 1) // m) * m


def _ffn_kernel(x_ref, w1_ref, b1_ref, w2_ref, b2_ref, gamma_ref, beta_ref,
                o_ref, acc_ref, *, eps):
    k = pl.program_id(1)

    @pl.when(k == 0)
    def _init():
        acc_ref[...] = jnp.zeros_like(acc_ref)

    # GEMM1 on a d_hid slab: native-dtype operands, f32 accumulate.
    h = jnp.dot(x_ref[...], w1_ref[...], preferred_element_type=jnp.float32)
    h = h + b1_ref[...].astype(jnp.float32)
    # Exact (erf) GELU, elementwise in the hidden dim -> slab-wise decomposition is exact.
    h = 0.5 * h * (1.0 + jax.lax.erf(h * 0.7071067811865476))

    # GEMM2 partial sum over this d_hid slab (cast back to weight dtype for MXU rate).
    acc_ref[...] += jnp.dot(h.astype(w2_ref.dtype), w2_ref[...],
                            preferred_element_type=jnp.float32)

    @pl.when(k == pl.num_programs(1) - 1)
    def _finalize():
        y = acc_ref[...] + b2_ref[...].astype(jnp.float32)
        # dropout (eval mode: identity) + residual
        y = y + x_ref[...].astype(jnp.float32)
        # LayerNorm over last dim, eps=1e-6
        mean = jnp.mean(y, axis=-1, keepdims=True)
        centered = y - mean
        var = jnp.mean(centered * centered, axis=-1, keepdims=True)
        y = centered * jax.lax.rsqrt(var + eps)
        y = y * gamma_ref[...].astype(jnp.float32) + beta_ref[...].astype(jnp.float32)
        o_ref[...] = y.astype(o_ref.dtype)


def positionwise_feed_forward(x, w1, b1, w2, b2, gamma, beta, *,
                              eps=1e-6, tm=256, tk=512):
    """x: (B, S, d_in). w1: (d_in, d_hid), w2: (d_hid, d_in) (pre-transposed vs. torch)."""
    B, S, d_in = x.shape
    d_hid = w1.shape[1]
    M = B * S

    # ---- token (row) tiling: multiple of 8 sublanes, padded instead of asserted ----
    tm = max(8, min(tm, _round_up(M, 8)))
    tm = _round_up(tm, 8)
    M_pad = _round_up(M, tm)

    # ---- hidden (reduction) tiling: full dim if small, else 128-aligned slabs ----
    if d_hid <= tk:
        tk = d_hid
        d_hid_pad = d_hid
    else:
        tk = _round_up(tk, 128)
        d_hid_pad = _round_up(d_hid, tk)

    x2d = x.reshape(M, d_in)
    if M_pad != M:
        x2d = jnp.pad(x2d, ((0, M_pad - M), (0, 0)))

    w1p, b1p, w2p = w1, b1, w2
    if d_hid_pad != d_hid:
        # gelu(x@0 + 0) = 0 and the padded W2 rows are 0 -> padding contributes nothing.
        w1p = jnp.pad(w1, ((0, 0), (0, d_hid_pad - d_hid)))
        b1p = jnp.pad(b1, ((0, d_hid_pad - d_hid),))
        w2p = jnp.pad(w2, ((0, d_hid_pad - d_hid), (0, 0)))

    b1_2d = b1p.reshape(1, d_hid_pad)
    b2_2d = b2.reshape(1, d_in)
    gamma_2d = gamma.reshape(1, d_in)
    beta_2d = beta.reshape(1, d_in)

    grid = (M_pad // tm, d_hid_pad // tk)

    kernel = functools.partial(_ffn_kernel, eps=eps)

    bytes_accessed = int(
        x2d.size * x2d.dtype.itemsize
        + w1p.size * w1p.dtype.itemsize
        + w2p.size * w2p.dtype.itemsize
        + b1_2d.size * b1_2d.dtype.itemsize
        + b2_2d.size * b2_2d.dtype.itemsize
        + gamma_2d.size * gamma_2d.dtype.itemsize
        + beta_2d.size * beta_2d.dtype.itemsize
        + M_pad * d_in * x.dtype.itemsize)
    cost = pl.CostEstimate(
        flops=int(4 * M_pad * d_in * d_hid_pad),          # two GEMMs, 2 flops/MAC
        transcendentals=int(M_pad * d_hid_pad),           # erf per hidden element
        bytes_accessed=bytes_accessed)

    out2d = pl.pallas_call(
        kernel,
        out_shape=jax.ShapeDtypeStruct((M_pad, d_in), x.dtype),
        grid_spec=pltpu.PrefetchScalarGridSpec(
            num_scalar_prefetch=0,
            grid=grid,
            in_specs=[
                pl.BlockSpec((tm, d_in), lambda i, k: (i, 0)),        # x tile (resident over k)
                pl.BlockSpec((d_in, tk), lambda i, k: (0, k)),        # W1 slab
                pl.BlockSpec((1, tk), lambda i, k: (0, k)),           # b1 slab
                pl.BlockSpec((tk, d_in), lambda i, k: (k, 0)),        # W2 slab
                pl.BlockSpec((1, d_in), lambda i, k: (0, 0)),         # b2
                pl.BlockSpec((1, d_in), lambda i, k: (0, 0)),         # gamma
                pl.BlockSpec((1, d_in), lambda i, k: (0, 0)),         # beta
            ],
            out_specs=pl.BlockSpec((tm, d_in), lambda i, k: (i, 0)),
            scratch_shapes=[pltpu.VMEM((tm, d_in), jnp.float32)],     # f32 accumulator
        ),
        compiler_params=pltpu.CompilerParams(
            dimension_semantics=("parallel", "arbitrary"),
            vmem_limit_bytes=64 * 1024 * 1024),
        cost_estimate=cost,
    )(x2d, w1p, b1_2d, w2p, b2_2d, gamma_2d, beta_2d)

    return out2d[:M].reshape(B, S, d_in)


def _reference(x, w1, b1, w2, b2, gamma, beta, eps=1e-6):
    xf = x.astype(jnp.float32)
    h = jax.nn.gelu(xf @ w1.astype(jnp.float32) + b1.astype(jnp.float32),
                    approximate=False)
    y = h @ w2.astype(jnp.float32) + b2.astype(jnp.float32)
    y = y + xf
    mean = jnp.mean(y, axis=-1, keepdims=True)
    var = jnp.mean((y - mean) ** 2, axis=-1, keepdims=True)
    y = (y - mean) * jax.lax.rsqrt(var + eps)
    return (y * gamma + beta).astype(x.dtype)


def _make_params(key, d_in, d_hid, dtype):
    k1, k2, k3, k4 = jax.random.split(key, 4)
    lim1 = 1.0 / jnp.sqrt(d_in)
    lim2 = 1.0 / jnp.sqrt(d_hid)
    w1 = jax.random.uniform(k1, (d_in, d_hid), jnp.float32, -lim1, lim1).astype(dtype)
    b1 = jax.random.uniform(k2, (d_hid,), jnp.float32, -lim1, lim1).astype(dtype)
    w2 = jax.random.uniform(k3, (d_hid, d_in), jnp.float32, -lim2, lim2).astype(dtype)
    b2 = jax.random.uniform(k4, (d_in,), jnp.float32, -lim2, lim2).astype(dtype)
    gamma = jnp.ones((d_in,), dtype)
    beta = jnp.zeros((d_in,), dtype)
    return w1, b1, w2, b2, gamma, beta


if __name__ == "__main__":
    key = jax.random.PRNGKey(0)
    k_small, k_big, kp1, kp2 = jax.random.split(key, 4)

    # --- small smoke test (module-scale shapes) ---
    B, S, d_in, d_hid = 2, 8, 32, 64
    x = jax.random.normal(k_small, (B, S, d_in), dtype=jnp.float32)
    w1, b1, w2, b2, gamma, beta = _make_params(kp1, d_in, d_hid, jnp.float32)

    out = positionwise_feed_forward(x, w1, b1, w2, b2, gamma, beta)
    out = jax.block_until_ready(out)
    ref = _reference(x, w1, b1, w2, b2, gamma, beta)
    assert out.shape == (B, S, d_in)
    assert jnp.allclose(out, ref, atol=1e-4, rtol=1e-4), "mismatch vs reference (small)"

    # --- second test exercising token padding + multi-slab hidden streaming ---
    B2, S2, d_in2, d_hid2 = 2, 60, 128, 320          # M=120 (padded), d_hid padded to 384
    x2 = jax.random.normal(k_big, (B2, S2, d_in2), dtype=jnp.float32)
    p2 = _make_params(kp2, d_in2, d_hid2, jnp.float32)
    out2 = positionwise_feed_forward(x2, *p2, tm=256, tk=128)
    out2 = jax.block_until_ready(out2)
    ref2 = _reference(x2, *p2)
    assert out2.shape == (B2, S2, d_in2)
    assert jnp.allclose(out2, ref2, atol=1e-3, rtol=1e-3), "mismatch vs reference (padded)"

    print("KERNEL_OK")
</pallas_src>

<mosaic_0001>
module attributes {stable_mosaic.version = 11 : i64} {
  func.func @_ffn_kernel(%arg0: i32, %arg1: i32, %arg2: memref<16x32xf32, #tpu.memory_space<vmem>>, %arg3: memref<32x64xf32, #tpu.memory_space<vmem>>, %arg4: memref<1x64xf32, #tpu.memory_space<vmem>>, %arg5: memref<64x32xf32, #tpu.memory_space<vmem>>, %arg6: memref<1x32xf32, #tpu.memory_space<vmem>>, %arg7: memref<1x32xf32, #tpu.memory_space<vmem>>, %arg8: memref<1x32xf32, #tpu.memory_space<vmem>>, %arg9: memref<16x32xf32, #tpu.memory_space<vmem>>, %arg10: memref<16x32xf32, #tpu.memory_space<vmem>>) attributes {dimension_semantics = [#tpu.dimension_semantics<parallel>, #tpu.dimension_semantics<arbitrary>], iteration_bounds = array<i64: 1, 1>, scalar_prefetch = 0 : i64, scratch_operands = 1 : i64, tpu.core_type = #tpu.core_type<tc>, window_params = [{transform_indices = @transform_0, window_bounds = array<i64: 16, 32>}, {transform_indices = @transform_1, window_bounds = array<i64: 32, 64>}, {transform_indices = @transform_2, window_bounds = array<i64: 1, 64>}, {transform_indices = @transform_3, window_bounds = array<i64: 64, 32>}, {pipeline_mode = #tpu.pipeline_mode<synchronous>, transform_indices = @transform_4, window_bounds = array<i64: 1, 32>}, {pipeline_mode = #tpu.pipeline_mode<synchronous>, transform_indices = @transform_5, window_bounds = array<i64: 1, 32>}, {pipeline_mode = #tpu.pipeline_mode<synchronous>, transform_indices = @transform_6, window_bounds = array<i64: 1, 32>}, {transform_indices = @transform_7, window_bounds = array<i64: 16, 32>}]} {
    %c0_i32 = arith.constant 0 : i32
    %0 = arith.cmpi eq, %arg1, %c0_i32 : i32
    %1 = arith.extui %0 : i1 to i32
    %c0_i32_0 = arith.constant 0 : i32
    %2 = arith.cmpi ne, %1, %c0_i32_0 : i32
    scf.if %2 {
      %cst_18 = arith.constant 0.000000e+00 : f32
      %25 = vector.broadcast %cst_18 : f32 to vector<16x32xf32>
      %c0_19 = arith.constant 0 : index
      %c0_20 = arith.constant 0 : index
      %26 = vector.load %arg10[%c0_19, %c0_20] : memref<16x32xf32, #tpu.memory_space<vmem>>, vector<16x32xf32>
      tpu.vector_store %arg10[%c0_19, %c0_20], %25 {strides = array<i32>} : memref<16x32xf32, #tpu.memory_space<vmem>>, vector<16x32xf32>,
    } else {
    }
    %c0 = arith.constant 0 : index
    %c0_1 = arith.constant 0 : index
    %3 = vector.load %arg2[%c0, %c0_1] : memref<16x32xf32, #tpu.memory_space<vmem>>, vector<16x32xf32>
    %c0_2 = arith.constant 0 : index
    %c0_3 = arith.constant 0 : index
    %4 = vector.load %arg3[%c0_2, %c0_3] : memref<32x64xf32, #tpu.memory_space<vmem>>, vector<32x64xf32>
    %cst = arith.constant dense<0.000000e+00> : vector<16x64xf32>
    %5 = tpu.matmul %3, %4, %cst {dimension_numbers = #tpu.dot_dimension_numbers<[1], [0], [0], [1], [0, 0, 1, 1], [], []>} : vector<16x32xf32>, vector<32x64xf32>, vector<16x64xf32> -> vector<16x64xf32>
    %c0_4 = arith.constant 0 : index
    %c0_5 = arith.constant 0 : index
    %6 = vector.load %arg4[%c0_4, %c0_5] : memref<1x64xf32, #tpu.memory_space<vmem>>, vector<1x64xf32>
    %7 = vector.broadcast %6 : vector<1x64xf32> to vector<16x64xf32>
    %8 = arith.addf %5, %7 : vector<16x64xf32>
    %cst_6 = arith.constant 5.000000e-01 : f32
    %9 = vector.broadcast %cst_6 : f32 to vector<16x64xf32>
    %10 = arith.mulf %9, %8 : vector<16x64xf32>
    %cst_7 = arith.constant 0.707106769 : f32
    %11 = vector.broadcast %cst_7 : f32 to vector<16x64xf32>
    %12 = arith.mulf %8, %11 : vector<16x64xf32>
    %13 = math.erf %12 : vector<16x64xf32>
    %cst_8 = arith.constant 1.000000e+00 : f32
    %14 = vector.broadcast %cst_8 : f32 to vector<16x64xf32>
    %15 = arith.addf %14, %13 : vector<16x64xf32>
    %16 = arith.mulf %10, %15 : vector<16x64xf32>
    %c0_9 = arith.constant 0 : index
    %c0_10 = arith.constant 0 : index
    %17 = vector.load %arg10[%c0_9, %c0_10] : memref<16x32xf32, #tpu.memory_space<vmem>>, vector<16x32xf32>
    %c0_11 = arith.constant 0 : index
    %c0_12 = arith.constant 0 : index
    %18 = vector.load %arg5[%c0_11, %c0_12] : memref<64x32xf32, #tpu.memory_space<vmem>>, vector<64x32xf32>
    %cst_13 = arith.constant dense<0.000000e+00> : vector<16x32xf32>
    %19 = tpu.matmul %16, %18, %cst_13 {dimension_numbers = #tpu.dot_dimension_numbers<[1], [0], [0], [1], [0, 0, 1, 1], [], []>} : vector<16x64xf32>, vector<64x32xf32>, vector<16x32xf32> -> vector<16x32xf32>
    %20 = arith.addf %17, %19 : vector<16x32xf32>
    %c0_14 = arith.constant 0 : index
    %c0_15 = arith.constant 0 : index
    %21 = vector.load %arg10[%c0_14, %c0_15] : memref<16x32xf32, #tpu.memory_space<vmem>>, vector<16x32xf32>
    tpu.vector_store %arg10[%c0_14, %c0_15], %20 {strides = array<i32>} : memref<16x32xf32, #tpu.memory_space<vmem>>, vector<16x32xf32>,
    %c0_i32_16 = arith.constant 0 : i32
    %22 = arith.cmpi eq, %arg1, %c0_i32_16 : i32
    %23 = arith.extui %22 : i1 to i32
    %c0_i32_17 = arith.constant 0 : i32
    %24 = arith.cmpi ne, %23, %c0_i32_17 : i32
    scf.if %24 {
      %c0_18 = arith.constant 0 : index
      %c0_19 = arith.constant 0 : index
      %25 = vector.load %arg10[%c0_18, %c0_19] : memref<16x32xf32, #tpu.memory_space<vmem>>, vector<16x32xf32>
      %c0_20 = arith.constant 0 : index
      %c0_21 = arith.constant 0 : index
      %26 = vector.load %arg6[%c0_20, %c0_21] : memref<1x32xf32, #tpu.memory_space<vmem>>, vector<1x32xf32>
      %27 = vector.broadcast %26 : vector<1x32xf32> to vector<16x32xf32>
      %28 = arith.addf %25, %27 : vector<16x32xf32>
      %c0_22 = arith.constant 0 : index
      %c0_23 = arith.constant 0 : index
      %29 = vector.load %arg2[%c0_22, %c0_23] : memref<16x32xf32, #tpu.memory_space<vmem>>, vector<16x32xf32>
      %30 = arith.addf %28, %29 : vector<16x32xf32>
      %cst_24 = arith.constant dense<0.000000e+00> : vector<16xf32>
      %31 = vector.multi_reduction <add>, %30, %cst_24 [1] : vector<16x32xf32> to vector<16xf32>
      %32 = vector.shape_cast %31 : vector<16xf32> to vector<16x1xf32>
      %cst_25 = arith.constant 3.200000e+01 : f32
      %33 = vector.broadcast %cst_25 : f32 to vector<16x1xf32>
      %34 = arith.divf %32, %33 : vector<16x1xf32>
      %35 = vector.broadcast %34 : vector<16x1xf32> to vector<16x32xf32>
      %36 = arith.subf %30, %35 : vector<16x32xf32>
      %37 = arith.mulf %36, %36 : vector<16x32xf32>
      %cst_26 = arith.constant dense<0.000000e+00> : vector<16xf32>
      %38 = vector.multi_reduction <add>, %37, %cst_26 [1] : vector<16x32xf32> to vector<16xf32>
      %39 = vector.shape_cast %38 : vector<16xf32> to vector<16x1xf32>
      %cst_27 = arith.constant 3.200000e+01 : f32
      %40 = vector.broadcast %cst_27 : f32 to vector<16x1xf32>
      %41 = arith.divf %39, %40 : vector<16x1xf32>
      %cst_28 = arith.constant 9.99999997E-7 : f32
      %42 = vector.broadcast %cst_28 : f32 to vector<16x1xf32>
      %43 = arith.addf %41, %42 : vector<16x1xf32>
      %44 = math.rsqrt %43 : vector<16x1xf32>
      %45 = vector.broadcast %44 : vector<16x1xf32> to vector<16x32xf32>
      %46 = arith.mulf %36, %45 : vector<16x32xf32>
      %c0_29 = arith.constant 0 : index
      %c0_30 = arith.constant 0 : index
      %47 = vector.load %arg7[%c0_29, %c0_30] : memref<1x32xf32, #tpu.memory_space<vmem>>, vector<1x32xf32>
      %48 = vector.broadcast %47 : vector<1x32xf32> to vector<16x32xf32>
      %49 = arith.mulf %46, %48 : vector<16x32xf32>
      %c0_31 = arith.constant 0 : index
      %c0_32 = arith.constant 0 : index
      %50 = vector.load %arg8[%c0_31, %c0_32] : memref<1x32xf32, #tpu.memory_space<vmem>>, vector<1x32xf32>
      %51 = vector.broadcast %50 : vector<1x32xf32> to vector<16x32xf32>
      %52 = arith.addf %49, %51 : vector<16x32xf32>
      %c0_33 = arith.constant 0 : index
      %c0_34 = arith.constant 0 : index
      %53 = vector.load %arg9[%c0_33, %c0_34] : memref<16x32xf32, #tpu.memory_space<vmem>>, vector<16x32xf32>
      tpu.vector_store %arg9[%c0_33, %c0_34], %52 {strides = array<i32>} : memref<16x32xf32, #tpu.memory_space<vmem>>, vector<16x32xf32>,
    } else {
    }
    return
  }
  func.func @transform_0(%arg0: i32, %arg1: i32) -> (i32, i32) {
    %c0_i32 = arith.constant 0 : i32
    %c0_i32_0 = arith.constant 0 : i32
    return %arg0, %c0_i32 : i32, i32
  }
  func.func @transform_1(%arg0: i32, %arg1: i32) -> (i32, i32) {
    %c0_i32 = arith.constant 0 : i32
    %c0_i32_0 = arith.constant 0 : i32
    return %c0_i32, %arg1 : i32, i32
  }
  func.func @transform_2(%arg0: i32, %arg1: i32) -> (i32, i32) {
    %c0_i32 = arith.constant 0 : i32
    %c0_i32_0 = arith.constant 0 : i32
    return %c0_i32, %arg1 : i32, i32
  }
  func.func @transform_3(%arg0: i32, %arg1: i32) -> (i32, i32) {
    %c0_i32 = arith.constant 0 : i32
    %c0_i32_0 = arith.constant 0 : i32
    return %arg1, %c0_i32 : i32, i32
  }
  func.func @transform_4(%arg0: i32, %arg1: i32) -> (i32, i32) {
    %c0_i32 = arith.constant 0 : i32
    %c0_i32_0 = arith.constant 0 : i32
    %c0_i32_1 = arith.constant 0 : i32
    return %c0_i32, %c0_i32_0 : i32, i32
  }
  func.func @transform_5(%arg0: i32, %arg1: i32) -> (i32, i32) {
    %c0_i32 = arith.constant 0 : i32
    %c0_i32_0 = arith.constant 0 : i32
    %c0_i32_1 = arith.constant 0 : i32
    return %c0_i32, %c0_i32_0 : i32, i32
  }
  func.func @transform_6(%arg0: i32, %arg1: i32) -> (i32, i32) {
    %c0_i32 = arith.constant 0 : i32
    %c0_i32_0 = arith.constant 0 : i32
    %c0_i32_1 = arith.constant 0 : i32
    return %c0_i32, %c0_i32_0 : i32, i32
  }
  func.func @transform_7(%arg0: i32, %arg1: i32) -> (i32, i32) {
    %c0_i32 = arith.constant 0 : i32
    %c0_i32_0 = arith.constant 0 : i32
    return %arg0, %c0_i32 : i32, i32
  }
}

</mosaic_0001>

<bundles_post_ra>
// kernel: tpu_custom_call.1
= control target key start
LH: loop header
LB: loop body
LE: loop exit
PB: predicated region body
PF: predicated region fallthrough
CT: control target
= control target key end

     0   :  { %12 = vsyncpa [#allocation4], 0  ;;  %s879_s0 = inlined_call_operand.hbm [shape: f32[16,32], index: 0, kind: input, shape index: {}]   ;;  %s880_s1 = inlined_call_operand.hbm [shape: f32[32,64], index: 1, kind: input, shape index: {}]   ;;  %s881_s2 = inlined_call_operand.hbm [shape: f32[1,64], index: 2, kind: input, shape index: {}]   ;;  %s882_s3 = inlined_call_operand.hbm [shape: f32[64,32], index: 3, kind: input, shape index: {}]   ;;  %s883_s4 = inlined_call_operand.hbm [shape: f32[1,32], index: 4, kind: input, shape index: {}]   ;;  %s884_s5 = inlined_call_operand.hbm [shape: f32[1,32], index: 5, kind: input, shape index: {}]   ;;  %s885_s6 = inlined_call_operand.hbm [shape: f32[1,32], index: 6, kind: input, shape index: {}]   ;;  %s886_s7 = inlined_call_operand.hbm [shape: f32[16,32], index: 7, kind: output, shape index: {}]  }
   0x1   :  { %13 = vsyncpa [#allocation7], 0 }
   0x2   :  { %14 = vsyncpa [#allocation10], 0 }
   0x3   :  { %15 = vsyncpa [#allocation13], 0 }
   0x4   :  { %16 = vsyncpa [#allocation5], 0  ;;  %s690_s24 = smov [#allocation6]   ;;  %s691_s26 = smov [#allocation9]  }
   0x5   :  { %s34_s25 = sshll.u32 %s690_s24, 4  ;;  %s56_s27 = sshll.u32 %s691_s26, 4  ;;  %s35_s25 = int_to_ptr.vmem [resolvable:$true] %s34_s25  ;;  %s741_s27 = int_to_ptr.vmem [resolvable:$true] %s56_s27 }
   0x6   :  { %s504_s30 = scalar_lea.hbm %s880_s1, 512 }
   0x7   :  { %p505_p0 = scmp.ne.s32.totalorder %s880_s1, %s504_s30  ;;  %p508_p1 = scmp.lt.u32.totalorder %s504_s30, %s880_s1 }
   0x9   :  { %p510_p2 = pnand %p508_p1, %p505_p0 }
   0xb   :  { %513 = shalt.err (!%p510_p2)
}
   0xc   :  { %s514_s12 = scalar_lea.vmem %s35_s25, 512  ;;  %p519_p4 = scmp.lt.s32.totalorder %s35_s25, %s35_s25 }
   0xd   :  { %p515_p3 = scmp.ne.s32.totalorder %s35_s25, %s514_s12  ;;  %p520_p5 = scmp.lt.s32.totalorder %s514_s12, %s514_s12 }
   0xf   :  { %p521_p6 = por %p520_p5, %p519_p4 }
  0x11   :  { %p522_p7 = pnand %p521_p6, %p515_p3 }
  0x13   :  { %525 = shalt.err (!%p522_p7)
}
  0x14   :  { %s692_s13 = smov 128   ;;  %s693_s14 = smov 8  }
  0x15   :  { %40 = dma.hbm_to_vmem [thread:$0]  %s880_s1, 512, %s35_s25, [#allocation7], %s692_s13, %s692_s13, %s693_s14  }
  0x16   :  { %s526_s19 = scalar_lea.hbm %s882_s3, 1024 }
  0x17   :  { %p527_p8 = scmp.ne.s32.totalorder %s882_s3, %s526_s19  ;;  %p530_p9 = scmp.lt.u32.totalorder %s526_s19, %s882_s3 }
  0x19   :  { %p532_p10 = pnand %p530_p9, %p527_p8 }
  0x1b   :  { %535 = shalt.err (!%p532_p10)
}
  0x1c   :  { %s536_s24 = scalar_lea.vmem %s741_s27, 1024  ;;  %p541_p12 = scmp.lt.s32.totalorder %s741_s27, %s741_s27 }
  0x1d   :  { %p537_p11 = scmp.ne.s32.totalorder %s741_s27, %s536_s24  ;;  %p542_p13 = scmp.lt.s32.totalorder %s536_s24, %s536_s24 }
  0x1f   :  { %p543_p0 = por %p542_p13, %p541_p12 }
  0x21   :  { %p544_p1 = pnand %p543_p0, %p537_p11 }
  0x23   :  { %547 = shalt.err (!%p544_p1)
}
  0x24   :  { %62 = dma.hbm_to_vmem [thread:$0]  %s882_s3, 1024, %s741_s27, [#allocation10], %s692_s13, %s692_s13, %s693_s14  }
  0x25   :  { %s694_s26 = smov [#allocation12]   ;;  %s695_s29 = smov [#allocation3]  }
  0x26   :  { %s79_s28 = sshll.u32 %s694_s26, 4  ;;  %s22_s30 = sshll.u32 %s695_s29, 4  ;;  %s80_s28 = int_to_ptr.vmem [resolvable:$true] %s79_s28  ;;  %s778_s30 = int_to_ptr.vmem [resolvable:$true] %s22_s30 }
  0x27   :  { %s548_s10 = scalar_lea.hbm %s884_s5, 16 }
  0x28   :  { %p549_p2 = scmp.ne.s32.totalorder %s884_s5, %s548_s10  ;;  %p552_p3 = scmp.lt.u32.totalorder %s548_s10, %s884_s5 }
  0x2a   :  { %p554_p4 = pnand %p552_p3, %p549_p2 }
  0x2c   :  { %557 = shalt.err (!%p554_p4)
}
  0x2d   :  { %s558_s3 = scalar_lea.vmem %s80_s28, 16  ;;  %s562_s27 = scalar_lea.vmem %s80_s28, 32 }
  0x2e   :  { %p559_p5 = scmp.ne.s32.totalorder %s80_s28, %s558_s3  ;;  %p563_p6 = scmp.lt.s32.totalorder %s80_s28, %s80_s28 }
  0x2f   :  { %p564_p7 = scmp.lt.s32.totalorder %s562_s27, %s558_s3 }
  0x31   :  { %p565_p8 = por %p564_p7, %p563_p6 }
  0x33   :  { %p566_p9 = pnand %p565_p8, %p559_p5 }
  0x35   :  { %569 = shalt.err (!%p566_p9)
}
  0x36   :  { %82 = dma.hbm_to_vmem [thread:$0]  %s884_s5, 16, %s80_s28, [#allocation13]  }
  0x37   :  { %s570_s21 = scalar_lea.hbm %s879_s0, 256 }
  0x38   :  { %p571_p10 = scmp.ne.s32.totalorder %s879_s0, %s570_s21  ;;  %p574_p11 = scmp.lt.u32.totalorder %s570_s21, %s879_s0 }
  0x3a   :  { %p576_p12 = pnand %p574_p11, %p571_p10 }
  0x3c   :  { %579 = shalt.err (!%p576_p12)
}
  0x3d   :  { %s580_s25 = scalar_lea.vmem %s778_s30, 256  ;;  %p585_p0 = scmp.lt.s32.totalorder %s778_s30, %s778_s30 }
  0x3e   :  { %p581_p13 = scmp.ne.s32.totalorder %s778_s30, %s580_s25  ;;  %p586_p1 = scmp.lt.s32.totalorder %s580_s25, %s580_s25 }
  0x40   :  { %p587_p2 = por %p586_p1, %p585_p0 }
  0x42   :  { %p588_p3 = pnand %p587_p2, %p581_p13 }
  0x44   :  { %591 = shalt.err (!%p588_p3)
}
  0x45   :  { %28 = dma.hbm_to_vmem [thread:$0]  %s879_s0, 256, %s778_s30, [#allocation4], %s692_s13, %s692_s13, %s693_s14  }
  0x46   :  { %s696_s28 = smov [#allocation8]   ;;  %s697_s8 = smov [#allocation11]  }
  0x47   :  { %s47_s29 = sshll.u32 %s696_s28, 4  ;;  %s69_s9 = sshll.u32 %s697_s8, 4  ;;  %s48_s29 = int_to_ptr.vmem [resolvable:$true] %s47_s29  ;;  %s70_s9 = int_to_ptr.vmem [resolvable:$true] %s69_s9 }
  0x48   :  { %s592_s12 = scalar_lea.hbm %s881_s2, 16 }
  0x49   :  { %p593_p4 = scmp.ne.s32.totalorder %s881_s2, %s592_s12  ;;  %p596_p5 = scmp.lt.u32.totalorder %s592_s12, %s881_s2 }
  0x4b   :  { %p598_p6 = pnand %p596_p5, %p593_p4 }
  0x4d   :  { %601 = shalt.err (!%p598_p6)
}
  0x4e   :  { %s602_s0 = scalar_lea.vmem %s48_s29, 16  ;;  %s606_s30 = scalar_lea.vmem %s48_s29, 32 }
  0x4f   :  { %p603_p7 = scmp.ne.s32.totalorder %s48_s29, %s602_s0  ;;  %p607_p8 = scmp.lt.s32.totalorder %s48_s29, %s48_s29 }
  0x50   :  { %p608_p9 = scmp.lt.s32.totalorder %s606_s30, %s602_s0 }
  0x52   :  { %p609_p10 = por %p608_p9, %p607_p8 }
  0x54   :  { %p610_p11 = pnand %p609_p10, %p603_p7 }
  0x56   :  { %613 = shalt.err (!%p610_p11)
}
  0x57   :  { %50 = dma.hbm_to_vmem [thread:$0]  %s881_s2, 16, %s48_s29, [#allocation7]  }
  0x58   :  { %s614_s21 = scalar_lea.hbm %s883_s4, 16 }
  0x59   :  { %p615_p12 = scmp.ne.s32.totalorder %s883_s4, %s614_s21  ;;  %p618_p13 = scmp.lt.u32.totalorder %s614_s21, %s883_s4 }
  0x5b   :  { %p620_p0 = pnand %p618_p13, %p615_p12 }
  0x5d   :  { %623 = shalt.err (!%p620_p0)
}
  0x5e   :  { %s624_s25 = scalar_lea.vmem %s70_s9, 16  ;;  %s628_s5 = scalar_lea.vmem %s70_s9, 32 }
  0x5f   :  { %p625_p1 = scmp.ne.s32.totalorder %s70_s9, %s624_s25  ;;  %p629_p2 = scmp.lt.s32.totalorder %s70_s9, %s70_s9 }
  0x60   :  { %p630_p3 = scmp.lt.s32.totalorder %s628_s5, %s624_s25 }
  0x62   :  { %p631_p4 = por %p630_p3, %p629_p2 }
  0x64   :  { %p632_p5 = pnand %p631_p4, %p625_p1 }
  0x66   :  { %635 = shalt.err (!%p632_p5)
}
  0x67   :  { %72 = dma.hbm_to_vmem [thread:$0]  %s883_s4, 16, %s70_s9, [#allocation10]  }
  0x68   :  { %s698_s28 = smov [#allocation14]   ;;  %s636_s11 = scalar_lea.hbm %s885_s6, 16 }
  0x69   :  { %s89_s29 = sshll.u32 %s698_s28, 4  ;;  %p637_p6 = scmp.ne.s32.totalorder %s885_s6, %s636_s11  ;;  %s90_s29 = int_to_ptr.vmem [resolvable:$true] %s89_s29 }
  0x6a   :  { %p640_p7 = scmp.lt.u32.totalorder %s636_s11, %s885_s6 }
  0x6c   :  { %p642_p8 = pnand %p640_p7, %p637_p6 }
  0x6e   :  { %645 = shalt.err (!%p642_p8)
}
  0x6f   :  { %s646_s27 = scalar_lea.vmem %s90_s29, 16  ;;  %s650_s4 = scalar_lea.vmem %s90_s29, 32 }
  0x70   :  { %p647_p9 = scmp.ne.s32.totalorder %s90_s29, %s646_s27  ;;  %p651_p10 = scmp.lt.s32.totalorder %s90_s29, %s90_s29 }
  0x71   :  { %p652_p11 = scmp.lt.s32.totalorder %s650_s4, %s646_s27 }
  0x73   :  { %p653_p12 = por %p652_p11, %p651_p10 }
  0x75   :  { %p654_p13 = pnand %p653_p12, %p647_p9 }
  0x77   :  { %657 = shalt.err (!%p654_p13)
}
  0x78   :  { %92 = dma.hbm_to_vmem [thread:$0]  %s885_s6, 16, %s90_s29, [#allocation13]  }
  0x79   :  { %680 = dma.done.wait [#allocation4], 256  }
  0x7a   :  { %681 = vsyncadd [#allocation4], 4294967040 }
  0x7b   :  { %682 = dma.done.wait [#allocation7], 528  }
  0x7c   :  { %683 = vsyncadd [#allocation7], 4294966768 }
  0x7d   :  { %684 = dma.done.wait [#allocation10], 1040  }
  0x7e   :  { %685 = vsyncadd [#allocation10], 4294966256 }
  0x7f   :  { %686 = dma.done.wait [#allocation13], 32  }
  0x80   :  { %687 = vsyncadd [#allocation13], 4294967264  ;;  %vm118_vm0 = vcmask 261120   ;;  %v123_v0 = vld [vmem:[#allocation6] sm:$0xff]  ;;  %v124_v1 = vld [vmem:[#allocation6 + $0x8] sm:$0xff]  ;;  %v699_v20 = vmov 0.0  }
  0x81   :  { %v125_v2 = vld [vmem:[#allocation6 + $0x10] sm:$0xff]  ;;  %v461_v3 = vpack.c.bf16 %v124_v1, %v123_v0  ;;  %v126_v4 = vld [vmem:[#allocation6 + $0x18] sm:$0xff]  ;;  %v228_v8 = vld [vmem:[#allocation9] sm:$0xff]  ;;  %120 = vst.msk [vmem:[#allocation2 + $0x8] sm:$0xff] %vm118_vm0, %v699_v20  ;;  %vm236_vm1 = vcmask 523264   ;;  %s700_s6 = smov [#allocation15]  }
  0x82   :  { %v848_v5 = vld [vmem:[#allocation3] sm:$0xff]  ;;  %v465_v6 = vpack.c.bf16 %v126_v4, %v125_v2  ;;  %v122_v7 = vld [vmem:[#allocation3 + $0x8] sm:$0xff]  ;;  %v232_v14 = vld [vmem:[#allocation9 + $0x20] sm:$0xff]  ;;  %119 = vst.msk [vmem:[#allocation2] sm:$0xff] %vm118_vm0, %v699_v20  ;;  %s392_s30 = sshll.u32 %s700_s6, 4  ;;  %s393_s30 = int_to_ptr.vmem [resolvable:$true] %s392_s30 }
  0x83   :  { %439 = vmatprep.mubr.msk.f32.mxu0 %vm118_vm0, %v848_v5  ;;  %462 = vmatprep.subr.bf16.mxu0 %v461_v3  ;;  %v229_v9 = vld [vmem:[#allocation9 + $0x8] sm:$0xff]  ;;  %v230_v11 = vld [vmem:[#allocation9 + $0x10] sm:$0xff]  ;;  %v231_v12 = vld [vmem:[#allocation9 + $0x18] sm:$0xff]  ;;  %s658_s17 = scalar_lea.vmem %s393_s30, 256  ;;  %p663_p1 = scmp.lt.s32.totalorder %s393_s30, %s393_s30 }
  0x84   :  { %464 = vmatpush3.bf16.msra.mxu0 %v461_v3  ;;  %v469_v10 = vpack.c.bf16 %v229_v9, %v228_v8  ;;  %v473_v13 = vpack.c.bf16 %v231_v12, %v230_v11  ;;  %v233_v15 = vld [vmem:[#allocation9 + $0x28] sm:$0xff]  ;;  %v234_v17 = vld [vmem:[#allocation9 + $0x30] sm:$0xff]  ;;  %v235_v18 = vld [vmem:[#allocation9 + $0x38] sm:$0xff]  ;;  %p659_p0 = scmp.ne.s32.totalorder %s393_s30, %s658_s17  ;;  %p664_p2 = scmp.lt.s32.totalorder %s658_s17, %s658_s17 }
  0x85   :  { %466 = vmatprep.subr.bf16.mxu0 %v465_v6  ;;  %v477_v16 = vpack.c.bf16 %v233_v15, %v232_v14  ;;  %v481_v19 = vpack.c.bf16 %v235_v18, %v234_v17  ;;  %v407_v21 = vld [vmem:[#allocation8] ss:$0 sm:$0xff]  ;;  %v412_v42 = vld [vmem:[#allocation11] ss:$0 sm:$0xff]  ;;  %v413_v4 = vld [vmem:[#allocation12] ss:$0 sm:$0xff] }
  0x86   :  { %470 = vmatprep.subr.bf16.mxu1 %v469_v10  ;;  %p665_p3 = por %p664_p2, %p663_p1 }
  0x87   :  { %472 = vmatpush3.bf16.msra.mxu1 %v469_v10 }
  0x88   :  { %468 = vmatpush3.bf16.msra.mxu0 %v465_v6  ;;  %474 = vmatprep.subr.bf16.mxu1 %v473_v13  ;;  %v227_v36 = vld [vmem:[#allocation2 + $0x8] sm:$0xff]  ;;  %v414_v6 = vld [vmem:[#allocation14] ss:$0 sm:$0xff]  ;;  %p666_p4 = pnand %p665_p3, %p659_p0 }
  0x89   :  { %v226_v37 = vld [vmem:[#allocation2] sm:$0xff] }
  0x8b   :  { %440 = vmatmul.mubr.msk.f32.vlgmr.msra.gmra.mrb[0].mxu0 %vm118_vm0, %v122_v7  ;;  %476 = vmatpush3.bf16.msra.mxu1 %v473_v13 }
  0x8c   :  { %478 = vmatprep.subr.bf16.mxu1 %v477_v16 }
  0x8f   :  { %480 = vmatpush3.bf16.msra.mxu1 %v477_v16 }
  0x90   :  { %482 = vmatprep.subr.bf16.mxu1 %v481_v19 }
  0x93   :  { %484 = vmatpush3.bf16.msra.mxu1 %v481_v19 }
 0x15e   :  { %v441_v22 = vpop.f32.mrb[0].mxu0 }
 0x15f   :  { %v213_v23 = vadd.f32 %v441_v22, %v407_v21  ;;  %v207_v24 = vpop.f32.mrb[1].mxu0 }
 0x160   :  { %v208_v25 = vadd.f32 %v407_v21, %v207_v24 }
 0x161   :  { %v219_v26 = vmul.f32 0.70710677, %v213_v23  ;;  %v217_v33 = vmul.f32 0.5, %v213_v23 }
 0x162   :  { %v218_v27 = vmul.f32 0.70710677, %v208_v25  ;;  %v216_v31 = vmul.f32 0.5, %v208_v25 }
 0x163   :  { %496 = verf.f32 %v219_v26 }
 0x164   :  { %498 = verf.f32 %v218_v27 }
 0x16d   :  { %v497_v28 = vpop.eup %496 }
 0x16e   :  { %v499_v29 = vpop.eup %498  ;;  %v223_v30 = vadd.f32 1.0, %v497_v28 }
 0x16f   :  { %v222_v32 = vadd.f32 1.0, %v499_v29 }
 0x170   :  { %v225_v35 = vmul.f32 %v223_v30, %v217_v33 }
 0x171   :  { %v224_v34 = vmul.f32 %v222_v32, %v216_v31 }
 0x173   :  { %458 = vmatprep.mubr.msk.f32.mxu1 %vm236_vm1, %v224_v34 }
 0x174   :  { %459 = vmatmul.mubr.msk.f32.vlgmr.msra.gmra.mrb[0].mxu1 %vm236_vm1, %v225_v35 }
 0x247   :  { %v460_v38 = vpop.f32.mrb[0].mxu1 }
 0x248   :  { %v319_v39 = vadd.f32 %v460_v38, %v227_v36  ;;  %v309_v40 = vpop.f32.mrb[1].mxu1 }
 0x249   :  { %v318_v41 = vadd.f32 %v309_v40, %v226_v37 }
 0x24a   :  { %321 = vst.msk [vmem:[#allocation2 + $0x8] sm:$0xff] %vm118_vm0, %v319_v39 }
 0x24b   :  { %320 = vst.msk [vmem:[#allocation2] sm:$0xff] %vm118_vm0, %v318_v41 }
 0x251   :  { %v326_v43 = vld [vmem:[#allocation2 + $0x8] sm:$0xff] }
 0x252   :  { %v325_v44 = vld [vmem:[#allocation2] sm:$0xff]  ;;  %v335_v46 = vadd.f32 %v412_v42, %v326_v43 }
 0x253   :  { %v334_v45 = vadd.f32 %v412_v42, %v325_v44 }
 0x254   :  { %v339_v49 = vadd.f32 %v335_v46, %v122_v7 }
 0x255   :  { %v338_v47 = vadd.f32 %v334_v45, %v848_v5 }
 0x256   :  { %v343_v50 = vsel %vm118_vm0, %v339_v49, 0.0 }
 0x257   :  { %v340_v48 = vsel %vm118_vm0, %v338_v47, 0.0 }
 0x258   :  { %341 = vadd.xlane.f32.xlu0 %v340_v48 }
 0x25c   :  { %344 = vadd.xlane.f32.xlu0 %v343_v50 }
 0x2e5   :  { %v342_v51 = vpop.xlane.xlu0 %341 }
 0x2e6   :  { %v347_v52 = vmul.f32 0.03125, %v342_v51 }
 0x2e8   :  { %v349_v53 = vsub.f32 %v338_v47, %v347_v52 }
 0x2e9   :  { %v345_v54 = vpop.xlane.xlu0 %344 }
 0x2ea   :  { %v348_v55 = vmul.f32 0.03125, %v345_v54  ;;  %v351_v56 = vmul.f32 %v349_v53, %v349_v53 }
 0x2ec   :  { %v350_v57 = vsub.f32 %v339_v49, %v348_v55  ;;  %v353_v58 = vsel %vm118_vm0, %v351_v56, 0.0 }
 0x2ed   :  { %354 = vadd.xlane.f32.xlu1 %v353_v58 }
 0x2ee   :  { %v352_v59 = vmul.f32 %v350_v57, %v350_v57 }
 0x2f0   :  { %v356_v60 = vsel %vm118_vm0, %v352_v59, 0.0 }
 0x2f1   :  { %357 = vadd.xlane.f32.xlu1 %v356_v60 }
 0x37a   :  { %v355_v61 = vpop.xlane.xlu1 %354 }
 0x37b   :  { %v359_v62 = vmul.f32 0.03125, %v355_v61 }
 0x37d   :  { %v361_v63 = vadd.f32 1e-06, %v359_v62 }
 0x37e   :  { %v358_v0 = vpop.xlane.xlu1 %357 }
 0x37f   :  { %500 = vrsqrt.f32 %v361_v63  ;;  %v360_v1 = vmul.f32 0.03125, %v358_v0 }
 0x381   :  { %v362_v2 = vadd.f32 1e-06, %v360_v1 }
 0x383   :  { %502 = vrsqrt.f32 %v362_v2 }
 0x389   :  { %v501_v3 = vpop.eup %500 }
 0x38a   :  { %v365_v5 = vmul.f32 %v501_v3, %v349_v53 }
 0x38c   :  { %v374_v7 = vmul.f32 %v413_v4, %v365_v5 }
 0x38d   :  { %v503_v8 = vpop.eup %502 }
 0x38e   :  { %v366_v9 = vmul.f32 %v503_v8, %v350_v57  ;;  %v383_v10 = vadd.f32 %v414_v6, %v374_v7 }
 0x390   :  { %v375_v11 = vmul.f32 %v413_v4, %v366_v9  ;;  %385 = vst.msk [vmem:[#allocation15] sm:$0xff] %vm118_vm0, %v383_v10 }
 0x392   :  { %v384_v12 = vadd.f32 %v414_v6, %v375_v11 }
 0x394   :  { %386 = vst.msk [vmem:[#allocation15 + $0x8] sm:$0xff] %vm118_vm0, %v384_v12 }
 0x395   :  { %669 = shalt.err (!%p666_p4)
}
 0x396   :  { %s670_s20 = scalar_lea.hbm %s886_s7, 256 }
 0x397   :  { %p671_p5 = scmp.ne.s32.totalorder %s886_s7, %s670_s20  ;;  %p674_p6 = scmp.lt.u32.totalorder %s670_s20, %s886_s7 }
 0x399   :  { %p676_p7 = pnand %p674_p6, %p671_p5 }
 0x39b   :  { %679 = shalt.err (!%p676_p7)
}
 0x39c   :  { %398 = dma.vmem_to_hbm [thread:$0]  %s393_s30, 256, %s886_s7, [#allocation5], %s692_s13, %s692_s13, %s693_s14  }
 0x39d   :  { %688 = dma.done.wait [#allocation5], 256  }
 0x39e   :  { %689 = vsyncadd [#allocation5], 4294967040 }
 0x39f   :  { %402 = vsyncpa [#allocation4], 1 }
 0x3a0   :  { %403 = vsyncpa [#allocation7], 1 }
 0x3a1   :  { %404 = vsyncpa [#allocation10], 1 }
 0x3a2   :  { %405 = vsyncpa [#allocation13], 1 }
 0x3a3   :  { %406 = vsyncpa [#allocation5], 1 }

</bundles_post_ra>
